<compile_context>
chip_gen: v6e
topology: v6e:2x2x1
jax: 0.10.0
libtpu: 0.0.40
codegen_flags: <defaults>
</compile_context>

<pallas_src>
import jax
import jax.numpy as jnp
from jax.experimental import pallas as pl
from jax.experimental.pallas import tpu as pltpu

ETA = 1e-6                      # Constants.eta in the bivae codebase
COMPUTE_DTYPE = jnp.bfloat16    # MXU operand dtype (accumulation stays f32)


# --------------------------------------------------------------------------
# Kernel
# --------------------------------------------------------------------------
def _make_kernel(hidden_dim, latent_dim, num_extra, compute_dtype):
    """Fused DoubleHeadMLP forward for a static number of extra hidden layers."""
    H = hidden_dim
    L = latent_dim
    L2 = 2 * latent_dim
    f32 = jnp.float32
    cd = compute_dtype

    def kernel(*refs):
        if num_extra > 0:
            (x0_ref, x1_ref, w1_ref, w2_ref, wenc_a_ref, wenc_b_ref,
             we_ref, whead_ref, bias_ref, out_ref) = refs
        else:
            (x0_ref, x1_ref, w1_ref, w2_ref, wenc_a_ref, wenc_b_ref,
             whead_ref, bias_ref, out_ref) = refs
            we_ref = None

        # packed biases: row 0 = b1, 1 = b2, 2 = benc, 3..3+k-1 = be_i,
        # last row = [b21 | b22]  (all f32, padded to width W)
        b1 = bias_ref[0:1, :H]
        b2 = bias_ref[1:2, :H]
        benc = bias_ref[2:3, :H]
        bhead = bias_ref[3 + num_extra:4 + num_extra, :L2]

        # input head 1: Linear(size1, H) + ReLU   (bf16 MXU, f32 accumulate)
        h0 = jnp.maximum(
            jnp.dot(x0_ref[...], w1_ref[...], preferred_element_type=f32) + b1,
            0.0)
        # input head 2: Linear(size2, H) + ReLU
        h1 = jnp.maximum(
            jnp.dot(x1_ref[...], w2_ref[...], preferred_element_type=f32) + b2,
            0.0)

        # concat([h0, h1], dim=1) @ Wenc  ==  h0 @ Wenc[:H] + h1 @ Wenc[H:]
        e = jnp.maximum(
            jnp.dot(h0.astype(cd), wenc_a_ref[...], preferred_element_type=f32)
            + jnp.dot(h1.astype(cd), wenc_b_ref[...], preferred_element_type=f32)
            + benc, 0.0)

        # optional extra hidden layers (Linear(H, H) + ReLU), statically unrolled
        for i in range(num_extra):
            be_i = bias_ref[3 + i:4 + i, :H]
            e = jnp.maximum(
                jnp.dot(e.astype(cd), we_ref[i], preferred_element_type=f32)
                + be_i, 0.0)

        # fused heads: [fc21 | fc22] in a single matmul -> (tb, 2*latent)
        head = (jnp.dot(e.astype(cd), whead_ref[...], preferred_element_type=f32)
                + bhead)

        # columns [0, L)  -> mu (identity)
        # columns [L, 2L) -> exp(0.5 * logvar) + eta
        col = jax.lax.broadcasted_iota(jnp.int32, head.shape, dimension=1)
        out_ref[...] = jnp.where(col < L, head, jnp.exp(0.5 * head) + ETA)

    return kernel


# --------------------------------------------------------------------------
# Parameter creation / packing
# --------------------------------------------------------------------------
def init_params(key, size1, size2, hidden_dim, latent_dim, num_hidden_layers=1):
    """Deterministic synthetic parameters (weights stored (in, out), f32)."""
    ks = jax.random.split(key, 16)
    s = 0.05
    num_extra = num_hidden_layers - 1
    params = {
        "w1": s * jax.random.normal(ks[0], (size1, hidden_dim), jnp.float32),
        "b1": s * jax.random.normal(ks[1], (1, hidden_dim), jnp.float32),
        "w2": s * jax.random.normal(ks[2], (size2, hidden_dim), jnp.float32),
        "b2": s * jax.random.normal(ks[3], (1, hidden_dim), jnp.float32),
        # encoder first layer Linear(2H, H) split into two (H, H) halves
        "wenc_a": s * jax.random.normal(ks[4], (hidden_dim, hidden_dim), jnp.float32),
        "wenc_b": s * jax.random.normal(ks[5], (hidden_dim, hidden_dim), jnp.float32),
        "benc": s * jax.random.normal(ks[6], (1, hidden_dim), jnp.float32),
        "w21": s * jax.random.normal(ks[7], (hidden_dim, latent_dim), jnp.float32),
        "b21": s * jax.random.normal(ks[8], (1, latent_dim), jnp.float32),
        "w22": s * jax.random.normal(ks[9], (hidden_dim, latent_dim), jnp.float32),
        "b22": s * jax.random.normal(ks[10], (1, latent_dim), jnp.float32),
    }
    if num_extra > 0:
        params["we"] = s * jax.random.normal(
            ks[11], (num_extra, hidden_dim, hidden_dim), jnp.float32)
        params["be"] = s * jax.random.normal(
            ks[12], (num_extra, 1, hidden_dim), jnp.float32)
    return params


def pack_params(params, hidden_dim, latent_dim, num_hidden_layers=1,
                compute_dtype=COMPUTE_DTYPE):
    """Pack params for the kernel: fused head weight, packed bias tile, bf16 weights."""
    num_extra = num_hidden_layers - 1
    W = max(hidden_dim, 2 * latent_dim)

    def pad_row(v):                                    # v: (1, n) -> (1, W)
        return jnp.pad(v, ((0, 0), (0, W - v.shape[-1])))

    rows = [pad_row(params["b1"]), pad_row(params["b2"]), pad_row(params["benc"])]
    for i in range(num_extra):
        rows.append(pad_row(params["be"][i]))
    bhead = jnp.concatenate([params["b21"], params["b22"]], axis=1)
    rows.append(pad_row(bhead))
    biases = jnp.concatenate(rows, axis=0).astype(jnp.float32)      # (R, W) f32

    packed = {
        "w1": params["w1"].astype(compute_dtype),
        "w2": params["w2"].astype(compute_dtype),
        "wenc_a": params["wenc_a"].astype(compute_dtype),
        "wenc_b": params["wenc_b"].astype(compute_dtype),
        # fused [fc21 | fc22] weight: (H, 2*latent)
        "whead": jnp.concatenate(
            [params["w21"], params["w22"]], axis=1).astype(compute_dtype),
        "biases": biases,
    }
    if num_extra > 0:
        packed["we"] = params["we"].astype(compute_dtype)
    return packed


# --------------------------------------------------------------------------
# Forward wrapper
# --------------------------------------------------------------------------
def double_head_mlp(x0, x1, packed, hidden_dim, latent_dim, num_hidden_layers=1):
    """Forward pass of DoubleHeadMLP. x0, x1 are NCHW; returns (mu, lv)."""
    B = x0.shape[0]
    num_extra = num_hidden_layers - 1
    compute_dtype = packed["w1"].dtype
    L2 = 2 * latent_dim

    # torch: x[i].view(*x[i].size()[:-3], -1)  -> flatten last 3 dims
    x0f = x0.reshape(B, -1).astype(compute_dtype)
    x1f = x1.reshape(B, -1).astype(compute_dtype)
    size1 = x0f.shape[1]
    size2 = x1f.shape[1]

    # batch tile: parallel grid axis (lights up 2nd TC on v7x when B is large;
    # degenerates to a single grid step at toy shapes).
    tb = B
    for cand in (256, 128):
        if B > cand and B % cand == 0:
            tb = cand
            break
    grid = (pl.cdiv(B, tb),)

    inputs = [x0f, x1f,
              packed["w1"], packed["w2"],
              packed["wenc_a"], packed["wenc_b"]]
    in_specs = [
        pl.BlockSpec((tb, size1), lambda b: (b, 0)),
        pl.BlockSpec((tb, size2), lambda b: (b, 0)),
        pl.BlockSpec(packed["w1"].shape, lambda b: (0, 0)),
        pl.BlockSpec(packed["w2"].shape, lambda b: (0, 0)),
        pl.BlockSpec(packed["wenc_a"].shape, lambda b: (0, 0)),
        pl.BlockSpec(packed["wenc_b"].shape, lambda b: (0, 0)),
    ]
    if num_extra > 0:
        inputs.append(packed["we"])
        in_specs.append(pl.BlockSpec(packed["we"].shape, lambda b: (0, 0, 0)))
    inputs += [packed["whead"], packed["biases"]]
    in_specs += [
        pl.BlockSpec(packed["whead"].shape, lambda b: (0, 0)),
        pl.BlockSpec(packed["biases"].shape, lambda b: (0, 0)),
    ]

    out_shape = jax.ShapeDtypeStruct((B, L2), jnp.float32)
    out_spec = pl.BlockSpec((tb, L2), lambda b: (b, 0))

    # vmem limit sized to actual footprint (with double-buffer headroom),
    # clamped into a sane range.
    total_bytes = sum(int(a.size) * a.dtype.itemsize for a in inputs)
    total_bytes += B * L2 * 4
    vmem_limit = int(min(120 * (1 << 20), max(32 * (1 << 20), 4 * total_bytes)))

    kernel = _make_kernel(hidden_dim, latent_dim, num_extra, compute_dtype)

    out = pl.pallas_call(
        kernel,
        out_shape=out_shape,
        grid=grid,
        in_specs=in_specs,
        out_specs=out_spec,
        compiler_params=pltpu.CompilerParams(
            dimension_semantics=("parallel",),
            vmem_limit_bytes=vmem_limit),
    )(*inputs)

    mu = out[:, :latent_dim]
    lv = out[:, latent_dim:]
    return mu, lv


# --------------------------------------------------------------------------
# Pure-JAX reference mirroring the PyTorch forward
# --------------------------------------------------------------------------
def _reference(x0, x1, params, num_hidden_layers=1, compute_dtype=jnp.float32):
    f32 = jnp.float32
    cd = compute_dtype
    B = x0.shape[0]
    x0f = x0.reshape(B, -1)
    x1f = x1.reshape(B, -1)

    def dot(a, w):
        return jnp.dot(a.astype(cd), w.astype(cd), preferred_element_type=f32)

    h0 = jax.nn.relu(dot(x0f, params["w1"]) + params["b1"])
    h1 = jax.nn.relu(dot(x1f, params["w2"]) + params["b2"])
    wenc = jnp.concatenate([params["wenc_a"], params["wenc_b"]], axis=0)
    e = jax.nn.relu(dot(jnp.concatenate([h0, h1], axis=1), wenc) + params["benc"])
    for i in range(num_hidden_layers - 1):
        e = jax.nn.relu(dot(e, params["we"][i]) + params["be"][i])
    mu = dot(e, params["w21"]) + params["b21"]
    lv = jnp.exp(0.5 * (dot(e, params["w22"]) + params["b22"])) + ETA
    return mu, lv


# --------------------------------------------------------------------------
if __name__ == "__main__":
    key = jax.random.PRNGKey(0)
    k_x0, k_x1, k_p = jax.random.split(key, 3)

    # modality 1: (B, 4, 16, 16) -> size1 = 1024
    # modality 2: (B, 1, 8, 8)   -> size2 = 64
    B, hidden_dim, latent_dim = 2, 32, 8
    x0 = jax.random.normal(k_x0, (B, 4, 16, 16), jnp.float32)
    x1 = jax.random.normal(k_x1, (B, 1, 8, 8), jnp.float32)
    size1 = 4 * 16 * 16
    size2 = 1 * 8 * 8

    for num_hidden_layers in (1, 2):
        params = init_params(k_p, size1, size2, hidden_dim, latent_dim,
                             num_hidden_layers)
        packed = pack_params(params, hidden_dim, latent_dim, num_hidden_layers,
                             COMPUTE_DTYPE)

        mu, lv = double_head_mlp(x0, x1, packed, hidden_dim, latent_dim,
                                 num_hidden_layers)
        jax.block_until_ready((mu, lv))
        assert mu.shape == (B, latent_dim) and lv.shape == (B, latent_dim)

        # precision-matched (bf16 MXU operand) reference: tight tolerance
        mu_bf, lv_bf = _reference(x0, x1, params, num_hidden_layers, COMPUTE_DTYPE)
        assert jnp.allclose(mu, mu_bf, atol=1e-2, rtol=1e-2)
        assert jnp.allclose(lv, lv_bf, atol=1e-2, rtol=1e-2)

        # full-f32 reference: loose tolerance (bf16 cast error bound)
        mu_f, lv_f = _reference(x0, x1, params, num_hidden_layers, jnp.float32)
        assert jnp.allclose(mu, mu_f, atol=5e-2, rtol=5e-2)
        assert jnp.allclose(lv, lv_f, atol=5e-2, rtol=5e-2)

    print("KERNEL_OK")
</pallas_src>

<mosaic_0001>
module attributes {stable_mosaic.version = 11 : i64} {
  func.func @kernel(%arg0: i32, %arg1: memref<2x1024xbf16, #tpu.memory_space<vmem>>, %arg2: memref<2x64xbf16, #tpu.memory_space<vmem>>, %arg3: memref<1024x32xbf16, #tpu.memory_space<vmem>>, %arg4: memref<64x32xbf16, #tpu.memory_space<vmem>>, %arg5: memref<32x32xbf16, #tpu.memory_space<vmem>>, %arg6: memref<32x32xbf16, #tpu.memory_space<vmem>>, %arg7: memref<32x16xbf16, #tpu.memory_space<vmem>>, %arg8: memref<4x32xf32, #tpu.memory_space<vmem>>, %arg9: memref<2x16xf32, #tpu.memory_space<vmem>>) attributes {dimension_semantics = [#tpu.dimension_semantics<parallel>], iteration_bounds = array<i64: 1>, scalar_prefetch = 0 : i64, scratch_operands = 0 : i64, tpu.core_type = #tpu.core_type<tc>, window_params = [{transform_indices = @transform_0, window_bounds = array<i64: 2, 1024>}, {transform_indices = @transform_1, window_bounds = array<i64: 2, 64>}, {pipeline_mode = #tpu.pipeline_mode<synchronous>, transform_indices = @transform_2, window_bounds = array<i64: 1024, 32>}, {pipeline_mode = #tpu.pipeline_mode<synchronous>, transform_indices = @transform_3, window_bounds = array<i64: 64, 32>}, {pipeline_mode = #tpu.pipeline_mode<synchronous>, transform_indices = @transform_4, window_bounds = array<i64: 32, 32>}, {pipeline_mode = #tpu.pipeline_mode<synchronous>, transform_indices = @transform_5, window_bounds = array<i64: 32, 32>}, {pipeline_mode = #tpu.pipeline_mode<synchronous>, transform_indices = @transform_6, window_bounds = array<i64: 32, 16>}, {pipeline_mode = #tpu.pipeline_mode<synchronous>, transform_indices = @transform_7, window_bounds = array<i64: 4, 32>}, {transform_indices = @transform_8, window_bounds = array<i64: 2, 16>}]} {
    %c0 = arith.constant 0 : index
    %c0_0 = arith.constant 0 : index
    %0 = vector.load %arg8[%c0, %c0_0] : memref<4x32xf32, #tpu.memory_space<vmem>>, vector<1x32xf32>
    %c1 = arith.constant 1 : index
    %c0_1 = arith.constant 0 : index
    %1 = vector.load %arg8[%c1, %c0_1] : memref<4x32xf32, #tpu.memory_space<vmem>>, vector<1x32xf32>
    %c2 = arith.constant 2 : index
    %c0_2 = arith.constant 0 : index
    %2 = vector.load %arg8[%c2, %c0_2] : memref<4x32xf32, #tpu.memory_space<vmem>>, vector<1x32xf32>
    %c3 = arith.constant 3 : index
    %c0_3 = arith.constant 0 : index
    %3 = vector.load %arg8[%c3, %c0_3] : memref<4x32xf32, #tpu.memory_space<vmem>>, vector<1x16xf32>
    %c0_4 = arith.constant 0 : index
    %c0_5 = arith.constant 0 : index
    %4 = vector.load %arg1[%c0_4, %c0_5] : memref<2x1024xbf16, #tpu.memory_space<vmem>>, vector<2x1024xbf16>
    %c0_6 = arith.constant 0 : index
    %c0_7 = arith.constant 0 : index
    %5 = vector.load %arg3[%c0_6, %c0_7] : memref<1024x32xbf16, #tpu.memory_space<vmem>>, vector<1024x32xbf16>
    %cst = arith.constant dense<0.000000e+00> : vector<2x32xf32>
    %6 = tpu.matmul %4, %5, %cst {dimension_numbers = #tpu.dot_dimension_numbers<[1], [0], [0], [1], [0, 0, 1, 1], [], []>} : vector<2x1024xbf16>, vector<1024x32xbf16>, vector<2x32xf32> -> vector<2x32xf32>
    %7 = vector.broadcast %0 : vector<1x32xf32> to vector<2x32xf32>
    %8 = arith.addf %6, %7 : vector<2x32xf32>
    %cst_8 = arith.constant 0.000000e+00 : f32
    %9 = vector.broadcast %cst_8 : f32 to vector<2x32xf32>
    %10 = arith.maximumf %8, %9 : vector<2x32xf32>
    %c0_9 = arith.constant 0 : index
    %c0_10 = arith.constant 0 : index
    %11 = vector.load %arg2[%c0_9, %c0_10] : memref<2x64xbf16, #tpu.memory_space<vmem>>, vector<2x64xbf16>
    %c0_11 = arith.constant 0 : index
    %c0_12 = arith.constant 0 : index
    %12 = vector.load %arg4[%c0_11, %c0_12] : memref<64x32xbf16, #tpu.memory_space<vmem>>, vector<64x32xbf16>
    %cst_13 = arith.constant dense<0.000000e+00> : vector<2x32xf32>
    %13 = tpu.matmul %11, %12, %cst_13 {dimension_numbers = #tpu.dot_dimension_numbers<[1], [0], [0], [1], [0, 0, 1, 1], [], []>} : vector<2x64xbf16>, vector<64x32xbf16>, vector<2x32xf32> -> vector<2x32xf32>
    %14 = vector.broadcast %1 : vector<1x32xf32> to vector<2x32xf32>
    %15 = arith.addf %13, %14 : vector<2x32xf32>
    %cst_14 = arith.constant 0.000000e+00 : f32
    %16 = vector.broadcast %cst_14 : f32 to vector<2x32xf32>
    %17 = arith.maximumf %15, %16 : vector<2x32xf32>
    %18 = arith.truncf %10 : vector<2x32xf32> to vector<2x32xbf16>
    %c0_15 = arith.constant 0 : index
    %c0_16 = arith.constant 0 : index
    %19 = vector.load %arg5[%c0_15, %c0_16] : memref<32x32xbf16, #tpu.memory_space<vmem>>, vector<32x32xbf16>
    %cst_17 = arith.constant dense<0.000000e+00> : vector<2x32xf32>
    %20 = tpu.matmul %18, %19, %cst_17 {dimension_numbers = #tpu.dot_dimension_numbers<[1], [0], [0], [1], [0, 0, 1, 1], [], []>} : vector<2x32xbf16>, vector<32x32xbf16>, vector<2x32xf32> -> vector<2x32xf32>
    %21 = arith.truncf %17 : vector<2x32xf32> to vector<2x32xbf16>
    %c0_18 = arith.constant 0 : index
    %c0_19 = arith.constant 0 : index
    %22 = vector.load %arg6[%c0_18, %c0_19] : memref<32x32xbf16, #tpu.memory_space<vmem>>, vector<32x32xbf16>
    %cst_20 = arith.constant dense<0.000000e+00> : vector<2x32xf32>
    %23 = tpu.matmul %21, %22, %cst_20 {dimension_numbers = #tpu.dot_dimension_numbers<[1], [0], [0], [1], [0, 0, 1, 1], [], []>} : vector<2x32xbf16>, vector<32x32xbf16>, vector<2x32xf32> -> vector<2x32xf32>
    %24 = arith.addf %20, %23 : vector<2x32xf32>
    %25 = vector.broadcast %2 : vector<1x32xf32> to vector<2x32xf32>
    %26 = arith.addf %24, %25 : vector<2x32xf32>
    %cst_21 = arith.constant 0.000000e+00 : f32
    %27 = vector.broadcast %cst_21 : f32 to vector<2x32xf32>
    %28 = arith.maximumf %26, %27 : vector<2x32xf32>
    %29 = arith.truncf %28 : vector<2x32xf32> to vector<2x32xbf16>
    %c0_22 = arith.constant 0 : index
    %c0_23 = arith.constant 0 : index
    %30 = vector.load %arg7[%c0_22, %c0_23] : memref<32x16xbf16, #tpu.memory_space<vmem>>, vector<32x16xbf16>
    %cst_24 = arith.constant dense<0.000000e+00> : vector<2x16xf32>
    %31 = tpu.matmul %29, %30, %cst_24 {dimension_numbers = #tpu.dot_dimension_numbers<[1], [0], [0], [1], [0, 0, 1, 1], [], []>} : vector<2x32xbf16>, vector<32x16xbf16>, vector<2x16xf32> -> vector<2x16xf32>
    %32 = vector.broadcast %3 : vector<1x16xf32> to vector<2x16xf32>
    %33 = arith.addf %31, %32 : vector<2x16xf32>
    %34 = tpu.iota {dimensions = array<i32: 1>} : vector<2x16xi32>
    %c8_i32 = arith.constant 8 : i32
    %35 = vector.broadcast %c8_i32 : i32 to vector<2x16xi32>
    %36 = arith.cmpi slt, %34, %35 : vector<2x16xi32>
    %cst_25 = arith.constant 5.000000e-01 : f32
    %37 = vector.broadcast %cst_25 : f32 to vector<2x16xf32>
    %38 = arith.mulf %37, %33 : vector<2x16xf32>
    %39 = math.exp %38 : vector<2x16xf32>
    %cst_26 = arith.constant 9.99999997E-7 : f32
    %40 = vector.broadcast %cst_26 : f32 to vector<2x16xf32>
    %41 = arith.addf %39, %40 : vector<2x16xf32>
    %42 = arith.select %36, %33, %41 : vector<2x16xi1>, vector<2x16xf32>
    %c0_27 = arith.constant 0 : index
    %c0_28 = arith.constant 0 : index
    %43 = vector.load %arg9[%c0_27, %c0_28] : memref<2x16xf32, #tpu.memory_space<vmem>>, vector<2x16xf32>
    tpu.vector_store %arg9[%c0_27, %c0_28], %42 {strides = array<i32>} : memref<2x16xf32, #tpu.memory_space<vmem>>, vector<2x16xf32>,
    return
  }
  func.func @transform_0(%arg0: i32) -> (i32, i32) {
    %c0_i32 = arith.constant 0 : i32
    %c0_i32_0 = arith.constant 0 : i32
    return %arg0, %c0_i32 : i32, i32
  }
  func.func @transform_1(%arg0: i32) -> (i32, i32) {
    %c0_i32 = arith.constant 0 : i32
    %c0_i32_0 = arith.constant 0 : i32
    return %arg0, %c0_i32 : i32, i32
  }
  func.func @transform_2(%arg0: i32) -> (i32, i32) {
    %c0_i32 = arith.constant 0 : i32
    %c0_i32_0 = arith.constant 0 : i32
    %c0_i32_1 = arith.constant 0 : i32
    return %c0_i32, %c0_i32_0 : i32, i32
  }
  func.func @transform_3(%arg0: i32) -> (i32, i32) {
    %c0_i32 = arith.constant 0 : i32
    %c0_i32_0 = arith.constant 0 : i32
    %c0_i32_1 = arith.constant 0 : i32
    return %c0_i32, %c0_i32_0 : i32, i32
  }
  func.func @transform_4(%arg0: i32) -> (i32, i32) {
    %c0_i32 = arith.constant 0 : i32
    %c0_i32_0 = arith.constant 0 : i32
    %c0_i32_1 = arith.constant 0 : i32
    return %c0_i32, %c0_i32_0 : i32, i32
  }
  func.func @transform_5(%arg0: i32) -> (i32, i32) {
    %c0_i32 = arith.constant 0 : i32
    %c0_i32_0 = arith.constant 0 : i32
    %c0_i32_1 = arith.constant 0 : i32
    return %c0_i32, %c0_i32_0 : i32, i32
  }
  func.func @transform_6(%arg0: i32) -> (i32, i32) {
    %c0_i32 = arith.constant 0 : i32
    %c0_i32_0 = arith.constant 0 : i32
    %c0_i32_1 = arith.constant 0 : i32
    return %c0_i32, %c0_i32_0 : i32, i32
  }
  func.func @transform_7(%arg0: i32) -> (i32, i32) {
    %c0_i32 = arith.constant 0 : i32
    %c0_i32_0 = arith.constant 0 : i32
    %c0_i32_1 = arith.constant 0 : i32
    return %c0_i32, %c0_i32_0 : i32, i32
  }
  func.func @transform_8(%arg0: i32) -> (i32, i32) {
    %c0_i32 = arith.constant 0 : i32
    %c0_i32_0 = arith.constant 0 : i32
    return %arg0, %c0_i32 : i32, i32
  }
}

</mosaic_0001>

<bundles_post_ra>
// kernel: tpu_custom_call.1
= control target key start
LH: loop header
LB: loop body
LE: loop exit
PB: predicated region body
PF: predicated region fallthrough
CT: control target
= control target key end

     0   :  { %v173_v27 = vlaneseq  ;;  %v1391_v35 = vmov 1966171168   ;;  %s1719_s0 = inlined_call_operand.vmem [shape: bf16[2,1024], index: 0, kind: input, shape index: {}]   ;;  %s1720_s1 = inlined_call_operand.vmem [shape: bf16[2,64], index: 1, kind: input, shape index: {}]   ;;  %s1721_s2 = inlined_call_operand.vmem [shape: bf16[1024,32], index: 2, kind: input, shape index: {}]   ;;  %s1722_s3 = inlined_call_operand.vmem [shape: bf16[64,32], index: 3, kind: input, shape index: {}]   ;;  %s1723_s4 = inlined_call_operand.vmem [shape: bf16[32,32], index: 4, kind: input, shape index: {}]   ;;  %s1724_s5 = inlined_call_operand.vmem [shape: bf16[32,32], index: 5, kind: input, shape index: {}]   ;;  %s1725_s6 = inlined_call_operand.vmem [shape: bf16[32,16], index: 6, kind: input, shape index: {}]   ;;  %s1726_s7 = inlined_call_operand.vmem [shape: f32[4,32], index: 7, kind: input, shape index: {}]   ;;  %s1727_s8 = inlined_call_operand.hbm [shape: f32[2,16], index: 8, kind: output, shape index: {}]  }
   0x1   :  { %v1292_v0 = vld [vmem:[%s1721_s2 + $0x78] sm:$0xff]   ;;  %v1296_v4 = vld [vmem:[%s1721_s2 + $0x70] sm:$0xff]   ;;  %v1300_v8 = vld [vmem:[%s1721_s2 + $0x68] sm:$0xff]   ;;  %v171_v36 = vunpack.c.l.s4 %v1391_v35 }
   0x2   :  { %v1293_v1 = vld [vmem:[%s1721_s2 + $0x38] sm:$0xff]   ;;  %1150 = vmatprep.subr.bf16.mxu0 %v1292_v0  ;;  %v1297_v5 = vld [vmem:[%s1721_s2 + $0x30] sm:$0xff]   ;;  %v1301_v9 = vld [vmem:[%s1721_s2 + $0x28] sm:$0xff]   ;;  %v174_v32 = vshrl.u32 %v173_v27, 7 }
   0x3   :  { %v1294_v2 = vld [vmem:[%s1721_s2 + $0xf8] sm:$0xff]   ;;  %1151 = vmatpush3.bf16.msra.mxu0 %v1293_v1  ;;  %v1298_v6 = vld [vmem:[%s1721_s2 + $0xf0] sm:$0xff]   ;;  %v1302_v10 = vld [vmem:[%s1721_s2 + $0xe8] sm:$0xff]   ;;  %v172_v39 = vunpack.c.0.s8 %v171_v36 }
   0x4   :  { %v1295_v3 = vld [vmem:[%s1721_s2 + $0xb8] sm:$0xff]   ;;  %1172 = vmatprep.subr.bf16.mxu1 %v1294_v2  ;;  %1152 = vmatprep.subr.bf16.mxu0 %v1296_v4  ;;  %v1299_v7 = vld [vmem:[%s1721_s2 + $0xb0] sm:$0xff]   ;;  %v1303_v11 = vld [vmem:[%s1721_s2 + $0xa8] sm:$0xff]  }
   0x5   :  { %1173 = vmatpush3.bf16.msra.mxu1 %v1295_v3  ;;  %v1304_v12 = vld [vmem:[%s1721_s2 + $0x60] sm:$0xff]   ;;  %v1308_v16 = vld [vmem:[%s1721_s2 + $0x58] sm:$0xff]   ;;  %v1312_v20 = vld [vmem:[%s1721_s2 + $0x50] sm:$0xff]   ;;  %v1546_v41 = vsub.s32 %v172_v39, %v174_v32 }
   0x6   :  { %1174 = vmatprep.subr.bf16.mxu1 %v1298_v6  ;;  %v1305_v13 = vld [vmem:[%s1721_s2 + $0x20] sm:$0xff]   ;;  %v1309_v17 = vld [vmem:[%s1721_s2 + $0x18] sm:$0xff]   ;;  %v1313_v21 = vld [vmem:[%s1721_s2 + $0x10] sm:$0xff]  }
   0x7   :  { %1153 = vmatpush3.bf16.msra.mxu0 %v1297_v5  ;;  %v1306_v14 = vld [vmem:[%s1721_s2 + $0xe0] sm:$0xff]   ;;  %v1310_v18 = vld [vmem:[%s1721_s2 + $0xd8] sm:$0xff]   ;;  %v1314_v22 = vld [vmem:[%s1721_s2 + $0xd0] sm:$0xff]  }
   0x8   :  { %1154 = vmatprep.subr.bf16.mxu0 %v1300_v8  ;;  %v1307_v15 = vld [vmem:[%s1721_s2 + $0xa0] sm:$0xff]   ;;  %v1311_v19 = vld [vmem:[%s1721_s2 + $0x98] sm:$0xff]   ;;  %v1315_v23 = vld [vmem:[%s1721_s2 + $0x90] sm:$0xff]  }
   0x9   :  { %1175 = vmatpush3.bf16.msra.mxu1 %v1299_v7  ;;  %v1316_v24 = vld [vmem:[%s1721_s2 + $0x48] sm:$0xff]   ;;  %v1320_v29 = vld [vmem:[%s1721_s2 + $0x40] sm:$0xff]   ;;  %v1325_v37 = vld [vmem:[%s1721_s2 + $0x178] sm:$0xff]  }
   0xa   :  { %1176 = vmatprep.subr.bf16.mxu1 %v1302_v10  ;;  %v1317_v25 = vld [vmem:[%s1721_s2 + $0x8] sm:$0xff]   ;;  %v1321_v30 = vld [vmem:[%s1721_s2] sm:$0xff]   ;;  %v1327_v40 = vld [vmem:[%s1721_s2 + $0x1f8] sm:$0xff]  }
   0xb   :  { %1155 = vmatpush3.bf16.msra.mxu0 %v1301_v9  ;;  %v1318_v26 = vld [vmem:[%s1721_s2 + $0xc8] sm:$0xff]   ;;  %v1322_v31 = vld [vmem:[%s1721_s2 + $0xc0] sm:$0xff]   ;;  %v1326_v47 = vld [vmem:[%s1721_s2 + $0x138] sm:$0xff]  }
   0xc   :  { %1156 = vmatprep.subr.bf16.mxu0 %v1304_v12  ;;  %v1319_v28 = vld [vmem:[%s1721_s2 + $0x88] sm:$0xff]   ;;  %v35_v33 = vld [vmem:[%s1719_s0] sm:$0xff]  ;;  %v1328_v49 = vld [vmem:[%s1721_s2 + $0x1b8] sm:$0xff]  }
   0xd   :  { %1177 = vmatpush3.bf16.msra.mxu1 %v1303_v11  ;;  %v1324_v34 = vld [vmem:[%s1721_s2 + $0x80] sm:$0xff]   ;;  %v169_v38 = vcombine.high %v35_v33, %v35_v33  ;;  %v176_v42 = vrot.slane %v35_v33, %v1546_v41  ;;  %v1329_v52 = vld [vmem:[%s1721_s2 + $0x170] sm:$0xff]   ;;  %v1333_v58 = vld [vmem:[%s1721_s2 + $0x168] sm:$0xff]  }
   0xe   :  { %1178 = vmatprep.subr.bf16.mxu1 %v1306_v14  ;;  %v1330_v54 = vld [vmem:[%s1721_s2 + $0x130] sm:$0xff]   ;;  %v1334_v59 = vld [vmem:[%s1721_s2 + $0x128] sm:$0xff]   ;;  %v1337_v62 = vld [vmem:[%s1721_s2 + $0x160] sm:$0xff]  }
   0xf   :  { %1157 = vmatpush3.bf16.msra.mxu0 %v1305_v13  ;;  %v1550_v43 = vrot.slane %v169_v38, %v1546_v41  ;;  %v184_v44 = vcombine.high %v176_v42, %v176_v42  ;;  %v192_v45 = vrot.slane %v176_v42, %v1546_v41  ;;  %v1331_v55 = vld [vmem:[%s1721_s2 + $0x1f0] sm:$0xff]   ;;  %v1335_v60 = vld [vmem:[%s1721_s2 + $0x1e8] sm:$0xff]   ;;  %v1338_v63 = vld [vmem:[%s1721_s2 + $0x120] sm:$0xff]  }
  0x10   :  { %1158 = vmatprep.subr.bf16.mxu0 %v1308_v16  ;;  %v1332_v57 = vld [vmem:[%s1721_s2 + $0x1b0] sm:$0xff]   ;;  %v1336_v61 = vld [vmem:[%s1721_s2 + $0x1a8] sm:$0xff]   ;;  %v1339_v0 = vld [vmem:[%s1721_s2 + $0x1e0] sm:$0xff]  }
  0x11   :  { %1179 = vmatpush3.bf16.msra.mxu1 %v1307_v15  ;;  %v185_v46 = vcombine.high %v1550_v43, %v1550_v43  ;;  %v206_v48 = vrot.slane %v184_v44, %v1546_v41  ;;  %v214_v51 = vcombine.high %v192_v45, %v192_v45  ;;  %v1340_v1 = vld [vmem:[%s1721_s2 + $0x1a0] sm:$0xff]   ;;  %v1341_v2 = vld [vmem:[%s1721_s2 + $0x158] sm:$0xff]   ;;  %v1345_v6 = vld [vmem:[%s1721_s2 + $0x150] sm:$0xff]  }
  0x12   :  { %1180 = vmatprep.subr.bf16.mxu1 %v1310_v18  ;;  %v1342_v3 = vld [vmem:[%s1721_s2 + $0x118] sm:$0xff]   ;;  %v1346_v7 = vld [vmem:[%s1721_s2 + $0x110] sm:$0xff]   ;;  %v1349_v10 = vld [vmem:[%s1721_s2 + $0x148] sm:$0xff]   ;;  %v199_v18 = vrot.slane %v1550_v43, %v1546_v41 }
  0x13   :  { %1159 = vmatpush3.bf16.msra.mxu0 %v1309_v17  ;;  %v213_v50 = vrot.slane %v185_v46, %v1546_v41  ;;  %642 = vmatprep.mubr.bf16.mxu0 %v206_v48  ;;  %v216_v53 = vcombine.high %v206_v48, %v206_v48  ;;  %v1343_v4 = vld [vmem:[%s1721_s2 + $0x1d8] sm:$0xff]   ;;  %v1347_v8 = vld [vmem:[%s1721_s2 + $0x1d0] sm:$0xff]   ;;  %v1350_v11 = vld [vmem:[%s1721_s2 + $0x108] sm:$0xff]  }
  0x14   :  { %1160 = vmatprep.subr.bf16.mxu0 %v1312_v20  ;;  %v1344_v5 = vld [vmem:[%s1721_s2 + $0x198] sm:$0xff]   ;;  %v1348_v9 = vld [vmem:[%s1721_s2 + $0x190] sm:$0xff]   ;;  %v1351_v12 = vld [vmem:[%s1721_s2 + $0x1c8] sm:$0xff]  }
  0x15   :  { %1181 = vmatpush3.bf16.msra.mxu1 %v1311_v19  ;;  %v217_v56 = vcombine.high %v213_v50, %v213_v50  ;;  %682 = vmatprep.mubr.bf16.mxu1 %v216_v53  ;;  %v1352_v13 = vld [vmem:[%s1721_s2 + $0x188] sm:$0xff]   ;;  %v1353_v14 = vld [vmem:[%s1721_s2 + $0x140] sm:$0xff]  }
  0x16   :  { %1182 = vmatprep.subr.bf16.mxu1 %v1314_v22  ;;  %v1354_v15 = vld [vmem:[%s1721_s2 + $0x100] sm:$0xff]  }
  0x17   :  { %1161 = vmatpush3.bf16.msra.mxu0 %v1313_v21  ;;  %v1355_v16 = vld [vmem:[%s1721_s2 + $0x1c0] sm:$0xff]  }
  0x18   :  { %1162 = vmatprep.subr.bf16.mxu0 %v1316_v24  ;;  %v1356_v17 = vld [vmem:[%s1721_s2 + $0x180] sm:$0xff]  }
  0x19   :  { %1183 = vmatpush3.bf16.msra.mxu1 %v1315_v23 }
  0x1a   :  { %1184 = vmatprep.subr.bf16.mxu1 %v1318_v26 }
  0x1b   :  { %1163 = vmatpush3.bf16.msra.mxu0 %v1317_v25 }
  0x1c   :  { %1164 = vmatprep.subr.bf16.mxu0 %v1320_v29 }
  0x1d   :  { %1185 = vmatpush3.bf16.msra.mxu1 %v1319_v28 }
  0x1e   :  { %1186 = vmatprep.subr.bf16.mxu1 %v1322_v31 }
  0x1f   :  { %1165 = vmatpush3.bf16.msra.mxu0 %v1321_v30 }
  0x20   :  { %1194 = vmatprep.subr.bf16.mxu0 %v1325_v37 }
  0x21   :  { %1187 = vmatpush3.bf16.msra.mxu1 %v1324_v34 }
  0x22   :  { %1216 = vmatprep.subr.bf16.mxu1 %v1327_v40  ;;  %643 = vmatmul.mubr.bf16.vlgmr.msra.gmra.mxu0 %v192_v45 }
  0x23   :  { %1195 = vmatpush3.bf16.msra.mxu0 %v1326_v47  ;;  %722 = vmatprep.mubr.bf16.mxu0 %v213_v50 }
  0x24   :  { %683 = vmatmul.mubr.bf16.vlgmr.msra.gmra.mxu1 %v214_v51  ;;  %1196 = vmatprep.subr.bf16.mxu0 %v1329_v52 }
  0x25   :  { %1217 = vmatpush3.bf16.msra.mxu1 %v1328_v49  ;;  %762 = vmatprep.mubr.bf16.mxu1 %v217_v56 }
  0x26   :  { %1218 = vmatprep.subr.bf16.mxu1 %v1331_v55 }
  0x27   :  { %1197 = vmatpush3.bf16.msra.mxu0 %v1330_v54 }
  0x28   :  { %1198 = vmatprep.subr.bf16.mxu0 %v1333_v58 }
  0x29   :  { %1219 = vmatpush3.bf16.msra.mxu1 %v1332_v57 }
  0x2a   :  { %1220 = vmatprep.subr.bf16.mxu1 %v1335_v60 }
  0x2b   :  { %1199 = vmatpush3.bf16.msra.mxu0 %v1334_v59 }
  0x2c   :  { %1200 = vmatprep.subr.bf16.mxu0 %v1337_v62 }
  0x2d   :  { %1221 = vmatpush3.bf16.msra.mxu1 %v1336_v61 }
  0x2e   :  { %1222 = vmatprep.subr.bf16.mxu1 %v1339_v0 }
  0x2f   :  { %1201 = vmatpush3.bf16.msra.mxu0 %v1338_v63 }
  0x30   :  { %1202 = vmatprep.subr.bf16.mxu0 %v1341_v2 }
  0x31   :  { %1223 = vmatpush3.bf16.msra.mxu1 %v1340_v1 }
  0x32   :  { %1224 = vmatprep.subr.bf16.mxu1 %v1343_v4 }
  0x33   :  { %1203 = vmatpush3.bf16.msra.mxu0 %v1342_v3 }
  0x34   :  { %1204 = vmatprep.subr.bf16.mxu0 %v1345_v6 }
  0x35   :  { %1225 = vmatpush3.bf16.msra.mxu1 %v1344_v5 }
  0x36   :  { %1226 = vmatprep.subr.bf16.mxu1 %v1347_v8 }
  0x37   :  { %1205 = vmatpush3.bf16.msra.mxu0 %v1346_v7 }
  0x38   :  { %1206 = vmatprep.subr.bf16.mxu0 %v1349_v10 }
  0x39   :  { %1227 = vmatpush3.bf16.msra.mxu1 %v1348_v9 }
  0x3a   :  { %1228 = vmatprep.subr.bf16.mxu1 %v1351_v12 }
  0x3b   :  { %1207 = vmatpush3.bf16.msra.mxu0 %v1350_v11 }
  0x3c   :  { %1208 = vmatprep.subr.bf16.mxu0 %v1353_v14 }
  0x3d   :  { %1229 = vmatpush3.bf16.msra.mxu1 %v1352_v13 }
  0x3e   :  { %13 = vsyncpa [#allocation3], 0  ;;  %1230 = vmatprep.subr.bf16.mxu1 %v1355_v16  ;;  %v1357_v19 = vld [vmem:[%s1722_s3 + $0x18] sm:$0xff]   ;;  %v1392_v20 = vmov 0.0   ;;  %v215_v21 = vcombine.high %v199_v18, %v199_v18  ;;  %v1358_v22 = vld [vmem:[%s1722_s3 + $0x10] sm:$0xff]   ;;  %vm1393_vm0 = vmmov 0  }
  0x3f   :  { %1209 = vmatpush3.bf16.msra.mxu0 %v1354_v15  ;;  %v1359_v23 = vld [vmem:[%s1722_s3 + $0x8] sm:$0xff]   ;;  %v1360_v24 = vld [vmem:[%s1722_s3] sm:$0xff]   ;;  %vm808_vm1 = vcmask 523264   ;;  %vm875_vm2 = vcmask 261120   ;;  %s1394_s23 = smov [#allocation2]   ;;  %vm1052_vm4 = vcmask 123904  }
  0x40   :  { %1252 = vmatprep.subr.bf16.mxu0 %v1392_v20  ;;  %v771_v25 = vld [vmem:[%s1720_s1] sm:$0x1]  ;;  %v1361_v26 = vld [vmem:[%s1724_s5 + $0x8] sm:$0xff]   ;;  %v1133_v50 = vld [vmem:[%s1726_s7 + $0x1] ss:$0 sm:$0xff]  ;;  %s1060_s2 = sshll.u32 %s1394_s23, 4  ;;  %s1061_s2 = int_to_ptr.vmem [resolvable:$true] %s1060_s2 }
  0x41   :  { %1231 = vmatpush3.bf16.msra.mxu1 %v1356_v17  ;;  %v1362_v28 = vld [vmem:[%s1724_s5] sm:$0xff]   ;;  %v1363_v59 = vld [vmem:[%s1723_s4 + $0x8] sm:$0xff]   ;;  %p1374_p1 = scmp.lt.s32.totalorder %s1061_s2, %s1061_s2 }
  0x42   :  { %723 = vmatmul.mubr.bf16.vlgmr.msra.gmra.mxu0 %v199_v18  ;;  %1264 = vmatprep.subr.bf16.mxu1 %v1392_v20  ;;  %v1068_v45 = vld [vmem:[%s1726_s7] ss:$0 sm:$0xff]  ;;  %v1365_v2 = vld [vmem:[%s1725_s6 + $0x8] sm:$0xff]   ;;  %v1145_v8 = vld [vmem:[%s1726_s7 + $0x2] ss:$0 sm:$0xff] }
  0x43   :  { %1253 = vmatpush3.bf16.msra.mxu0 %v1357_v19  ;;  %1260 = vmatprep.mubr.msk.bf16.mxu0 %vm1393_vm0, %v1392_v20  ;;  %v1364_v63 = vld [vmem:[%s1723_s4] sm:$0xff]  }
  0x44   :  { %763 = vmatmul.mubr.bf16.vlgmr.msra.gmra.mxu1 %v215_v21  ;;  %1254 = vmatprep.subr.bf16.mxu0 %v1392_v20  ;;  %v1366_v3 = vld [vmem:[%s1725_s6] sm:$0xff]  }
  0x45   :  { %1268 = vmatprep.mubr.msk.bf16.mxu1 %vm1393_vm0, %v1392_v20  ;;  %1265 = vmatpush3.bf16.msra.mxu1 %v1361_v26  ;;  %v1146_v17 = vld [vmem:[%s1726_s7 + $0x3] ss:$0 sm:$0xff]  ;;  %s1369_s7 = scalar_lea.vmem %s1061_s2, 32 }
  0x46   :  { %1266 = vmatprep.subr.bf16.mxu1 %v1392_v20  ;;  %p1370_p0 = scmp.ne.s32.totalorder %s1061_s2, %s1369_s7  ;;  %p1375_p2 = scmp.lt.s32.totalorder %s1369_s7, %s1369_s7 }
  0x47   :  { %1255 = vmatpush3.bf16.msra.mxu0 %v1358_v22 }
  0x48   :  { %1256 = vmatprep.subr.bf16.mxu0 %v1392_v20  ;;  %p1376_p3 = por %p1375_p2, %p1374_p1 }
  0x49   :  { %1267 = vmatpush3.bf16.msra.mxu1 %v1362_v28 }
  0x4a   :  { %1272 = vmatprep.subr.bf16.mxu1 %v1392_v20  ;;  %p1377_p4 = pnand %p1376_p3, %p1370_p0 }
  0x4b   :  { %1257 = vmatpush3.bf16.msra.mxu0 %v1359_v23 }
  0x4c   :  { %1258 = vmatprep.subr.bf16.mxu0 %v1392_v20 }
  0x4f   :  { %1259 = vmatpush3.bf16.msra.mxu0 %v1360_v24 }
  0x50   :  { %1280 = vmatprep.subr.bf16.mxu0 %v1392_v20 }
  0x52   :  { %1261 = vmatmul.mubr.msk.bf16.vlgmr.msra.gmra.mxu0 %vm808_vm1, %v771_v25  ;;  %v1045_v25 = vand.u32 127, %v173_v27 }
  0x53   :  { %1284 = vmatprep.mubr.msk.bf16.mxu0 %vm1393_vm0, %v1392_v20  ;;  %1281 = vmatpush3.bf16.msra.mxu0 %v1365_v2 }
  0x54   :  { %1282 = vmatprep.subr.bf16.mxu0 %v1392_v20  ;;  %vm1046_vm3 = vcmp.lt.s32.totalorder %v1045_v25, 8 }
  0x57   :  { %1283 = vmatpush3.bf16.msra.mxu0 %v1366_v3 }
  0xe2   :  { %v1166_v29 = vpop.f32.mrf.mxu0 }
  0xe4   :  { %v1167_v30 = vpop.f32.mrf.mxu0  ;;  %v1188_v31 = vpop.f32.mrf.mxu1 }
  0xe5   :  { %v1168_v44 = vadd.f32 %v1167_v30, %v1166_v29 }
  0xe6   :  { %v1169_v32 = vpop.f32.mrf.mxu0  ;;  %v1189_v33 = vpop.f32.mrf.mxu1 }
  0xe7   :  { %v645_v47 = vadd.f32 %v1168_v44, %v1068_v45  ;;  %v1190_v48 = vadd.f32 %v1189_v33, %v1188_v31 }
  0xe8   :  { %v1170_v34 = vpop.f32.mrf.mxu0  ;;  %v1191_v35 = vpop.f32.mrf.mxu1 }
  0xe9   :  { %v685_v51 = vadd.f32 %v1190_v48, %v645_v47 }
  0xea   :  { %v1192_v36 = vpop.f32.mrf.mxu1 }
 0x102   :  { %v1210_v37 = vpop.f32.mrf.mxu0 }
 0x104   :  { %v1211_v38 = vpop.f32.mrf.mxu0  ;;  %v1232_v39 = vpop.f32.mrf.mxu1 }
 0x105   :  { %v1212_v49 = vadd.f32 %v1211_v38, %v1210_v37 }
 0x106   :  { %v1213_v40 = vpop.f32.mrf.mxu0  ;;  %v1233_v41 = vpop.f32.mrf.mxu1 }
 0x107   :  { %v725_v53 = vadd.f32 %v1212_v49, %v685_v51  ;;  %v1234_v54 = vadd.f32 %v1233_v41, %v1232_v39 }
 0x108   :  { %v1214_v42 = vpop.f32.mrf.mxu0  ;;  %v1235_v43 = vpop.f32.mrf.mxu1 }
 0x109   :  { %v765_v60 = vadd.f32 %v1234_v54, %v725_v53 }
 0x10a   :  { %v1236_v46 = vpop.f32.mrf.mxu1 }
 0x10b   :  { %v770_v0 = vmax.f32 %v765_v60, 0.0 }
 0x10d   :  { %v853_v1 = vpack.c.bf16 %v770_v0, %v770_v0 }
 0x112   :  { %v846_v52 = vpop.f32.mrf.mxu0 }
 0x113   :  { %v847_v55 = vadd.f32 %v1133_v50, %v846_v52 }
 0x114   :  { %v1262_v56 = vpop.f32.mrf.mxu0 }
 0x115   :  { %v852_v57 = vmax.f32 %v847_v55, 0.0 }
 0x116   :  { %v849_v58 = vpop.f32.mrf.mxu0 }
 0x117   :  { %v858_v61 = vpack.c.bf16 %v852_v57, %v852_v57 }
 0x118   :  { %v1263_v62 = vpop.f32.mrf.mxu0 }
 0x119   :  { %1269 = vmatmul.mubr.msk.bf16.vlgmr.msra.gmra.mxu1 %vm875_vm2, %v858_v61 }
 0x11a   :  { %1273 = vmatpush3.bf16.msra.mxu1 %v1363_v59  ;;  %1276 = vmatprep.mubr.msk.bf16.mxu1 %vm1393_vm0, %v1392_v20 }
 0x11b   :  { %1274 = vmatprep.subr.bf16.mxu1 %v1392_v20 }
 0x11e   :  { %1275 = vmatpush3.bf16.msra.mxu1 %v1364_v63 }
 0x121   :  { %1277 = vmatmul.mubr.msk.bf16.vlgmr.msra.gmra.mxu1 %vm875_vm2, %v853_v1 }
 0x1d9   :  { %v913_v4 = vpop.f32.mrf.mxu1 }
 0x1db   :  { %v1270_v5 = vpop.f32.mrf.mxu1 }
 0x1dd   :  { %v916_v6 = vpop.f32.mrf.mxu1 }
 0x1df   :  { %v1271_v7 = vpop.f32.mrf.mxu1 }
 0x1e1   :  { %v968_v9 = vpop.f32.mrf.mxu1 }
 0x1e2   :  { %v969_v10 = vadd.f32 %v968_v9, %v913_v4 }
 0x1e3   :  { %v1278_v11 = vpop.f32.mrf.mxu1 }
 0x1e4   :  { %v978_v12 = vadd.f32 %v1145_v8, %v969_v10 }
 0x1e5   :  { %v971_v13 = vpop.f32.mrf.mxu1 }
 0x1e6   :  { %v979_v14 = vmax.f32 %v978_v12, 0.0 }
 0x1e7   :  { %v1279_v15 = vpop.f32.mrf.mxu1 }
 0x1e8   :  { %v980_v16 = vpack.c.bf16 %v979_v14, %v979_v14 }
 0x1ea   :  { %1285 = vmatmul.mubr.msk.bf16.vlgmr.msra.gmra.mxu0 %vm875_vm2, %v980_v16 }
 0x2aa   :  { %v1038_v18 = vpop.f32.mrf.mxu0 }
 0x2ab   :  { %v1039_v19 = vadd.f32 %v1146_v17, %v1038_v18 }
 0x2ac   :  { %v1286_v20 = vpop.f32.mrf.mxu0 }
 0x2ad   :  { %v1047_v21 = vmul.f32 0.5, %v1039_v19 }
 0x2ae   :  { %v1041_v22 = vpop.f32.mrf.mxu0 }
 0x2af   :  { %v1048_v23 = vmul.f32 1.442695, %v1047_v21 }
 0x2b0   :  { %v1287_v24 = vpop.f32.mrf.mxu0 }
 0x2b1   :  { %1367 = vpow2.f32 %v1048_v23 }
 0x2be   :  { %v1368_v26 = vpop.eup %1367 }
 0x2bf   :  { %v1050_v28 = vadd.f32 1e-06, %v1368_v26 }
 0x2c1   :  { %v1051_v29 = vsel %vm1046_vm3, %v1039_v19, %v1050_v28 }
 0x2c2   :  { %1053 = vst.msk [vmem:[#allocation2] sm:$0x3] %vm1052_vm4, %v1051_v29 }
 0x2c3   :  { %1380 = shalt.err (!%p1377_p4)
}
 0x2c4   :  { %1063 = dma.vmem_to_hbm [thread:$0]  %s1061_s2, 32, %s1727_s8, [#allocation3]  }
 0x2c5   :  { %1389 = dma.done.wait [#allocation3], 32  }
 0x2c6   :  { %1390 = vsyncadd [#allocation3], 4294967264 }
 0x2c7   :  { %1067 = vsyncpa [#allocation3], 1 }

</bundles_post_ra>
